<compile_context>
chip_gen: v7x
topology: tpu7x:2x2x1
jax: 0.10.0
libtpu: 0.0.40
codegen_flags: <defaults>
</compile_context>

<pallas_src>
import functools

import jax
import jax.numpy as jnp
from jax import lax
from jax.experimental import pallas as pl
from jax.experimental.pallas import tpu as pltpu

LN_EPS = 1e-5      # torch.nn.LayerNorm default
NORM_EPS = 1e-12   # F.normalize default

# Per-layer params the device kernels consume, in kernel-argument order
# (q/k/ln_y1 are provably dead for seq == 1 and are not shipped).
_STACK_ORDER = ("lnx_g", "lnx_b", "wv", "bv",
                "ln2_g", "ln2_b", "wfc", "bfc", "wproj", "bproj")
_W_KEYS = ("wv", "wfc", "wproj")            # stored/streamed in bf16
_F32_KEYS = tuple(k for k in _STACK_ORDER if k not in _W_KEYS)


def _layernorm(v, g, b):
    m = jnp.mean(v, axis=-1, keepdims=True)
    c = v - m
    var = jnp.mean(c * c, axis=-1, keepdims=True)
    return c * lax.rsqrt(var + LN_EPS) * g + b


def _l2_normalize(v):
    # F.normalize: v / max(||v||, eps)  ==  v * rsqrt(max(||v||^2, eps^2)).
    # rsqrt runs on the EUP slot -> essentially free next to the VPU/MXU work.
    ss = jnp.sum(v * v, axis=-1, keepdims=True)
    return v * lax.rsqrt(jnp.maximum(ss, NORM_EPS * NORM_EPS))


# ----------------------------------------------------------------------------
# Stage 1: both CrossAttention stacks, grid = (branch, layer).
# ----------------------------------------------------------------------------
def branch_layer_kernel(x_in_ref,
                        lnx_g, lnx_b, wv, bv,
                        ln2_g, ln2_b, wfc, bfc, wproj, bproj,
                        x_out_ref):
    """One (branch, layer) grid step of corss_attn[0]/corss_attn[1].

    Weight refs are the (branch, layer) tile selected by the BlockSpecs; the
    running activation lives in the f32 output block, which stays VMEM
    resident across the innermost ("arbitrary") layer axis.
    """
    layer = pl.program_id(1)

    @pl.when(layer == 0)
    def _():
        # branch 0: x = image_feats, branch 1: x = target_feats.
        x_out_ref[...] = x_in_ref[...].astype(jnp.float32)

    x = x_out_ref[...]

    # seq == 1  =>  softmax over keys is exactly 1  =>  attention == value
    # projection of ln_x1(x); q/k/ln_y1 are dead code.
    xa = _layernorm(x, lnx_g[...], lnx_b[...])                       # ln_x1
    v = jnp.dot(xa.astype(jnp.bfloat16), wv[...],
                preferred_element_type=jnp.float32) + bv[...]
    x = x + v                                                        # residual 1

    z = _layernorm(x, ln2_g[...], ln2_b[...])                        # ln_2
    h = jnp.dot(z.astype(jnp.bfloat16), wfc[...],
                preferred_element_type=jnp.float32) + bfc[...]
    h = h * jax.nn.sigmoid(1.702 * h)                                # QuickGELU
    mlp = jnp.dot(h.astype(jnp.bfloat16), wproj[...],
                  preferred_element_type=jnp.float32) + bproj[...]
    x_out_ref[...] = x + mlp                                         # residual 2


# ----------------------------------------------------------------------------
# Stage 2: (x0 + x1)/2, normalize, logits (+ optional BSC term).
# ----------------------------------------------------------------------------
def epilogue_kernel(xbr_ref, txt_ref, out_ref, *, use_bsc):
    x0 = xbr_ref[0]                                # corss_attn[0](image, target)
    x1 = xbr_ref[1]                                # corss_attn[1](target, image)
    rel_n = _l2_normalize((x0 + x1) * 0.5)         # F.normalize(relative_feats)
    txt_n = _l2_normalize(txt_ref[...].astype(jnp.float32))

    # Transpose once and reuse so all products are plain (M,K)x(K,N) MXU dots
    # (avoids three implicit RHS transposes).
    txt_nT = txt_n.T
    logits = 100.0 * jnp.dot(rel_n, txt_nT, preferred_element_type=jnp.float32)
    if use_bsc:
        rel_nT = rel_n.T
        qm = jnp.dot(rel_n, rel_nT, preferred_element_type=jnp.float32)
        tm = jnp.dot(txt_n, txt_nT, preferred_element_type=jnp.float32)
        logits = logits + jnp.mean((qm - tm) ** 2)   # BSCLoss (MSE of Grams)

    # TODO(synk): for B < 128 the (B, B) store is lane-masked (vst.msk); a
    # lane-dense padded output only matters once B reaches production size.
    out_ref[...] = logits.astype(out_ref.dtype)


# ----------------------------------------------------------------------------
# Host-side wrappers.
# ----------------------------------------------------------------------------
def stack_alignment_params(params, n_layers, weight_dtype=jnp.bfloat16):
    """Stack per-layer dicts into (2, n_layers, ...) arrays for the kernels.

    Matmul weights go to `weight_dtype` (bf16 halves weight-DMA bytes on this
    bandwidth-bound kernel); LayerNorm params and biases stay f32.
    """
    branches = (params["cross0"], params["cross1"])

    def stack(key, dtype):
        return jnp.stack(
            [jnp.stack([branches[b][l][key].astype(dtype)
                        for l in range(n_layers)]) for b in range(2)])

    out = {k: stack(k, jnp.float32) for k in _F32_KEYS}
    out.update({k: stack(k, weight_dtype) for k in _W_KEYS})
    return out


def alignment_forward(image_feats, text_feats, target_feats, stacked_params,
                      n_layers, use_bsc=True):
    B, D = image_feats.shape
    hidden = stacked_params["wfc"].shape[-1]

    # --- stage 1: CrossAttention stacks, per-(branch, layer) weight streaming
    x_in = jnp.stack([image_feats, target_feats])           # (2, B, D)

    def per_layer_spec(key):
        arr = stacked_params[key]
        blk = (None, None) + arr.shape[2:]                  # one (br, l) tile
        return pl.BlockSpec(blk, lambda br, l: (br, l, 0, 0))

    flops = 4 * n_layers * B * (D * D + 2 * D * hidden)     # 2 branches
    w_bytes = int(sum(stacked_params[k].nbytes for k in _STACK_ORDER))
    bytes_accessed = w_bytes + 2 * int(x_in.nbytes) + B * B * 4

    x_br = pl.pallas_call(
        branch_layer_kernel,
        out_shape=jax.ShapeDtypeStruct((2, B, D), jnp.float32),
        grid_spec=pltpu.PrefetchScalarGridSpec(
            num_scalar_prefetch=0,
            grid=(2, n_layers),
            in_specs=[pl.BlockSpec((None, B, D), lambda br, l: (br, 0, 0))]
                     + [per_layer_spec(k) for k in _STACK_ORDER],
            out_specs=pl.BlockSpec((None, B, D), lambda br, l: (br, 0, 0)),
        ),
        compiler_params=pltpu.CompilerParams(
            # branch axis parallel (v7x megacore: each TC streams one branch's
            # weights); layer axis is the sequential accumulation axis.
            dimension_semantics=("parallel", "arbitrary")),
        cost_estimate=pl.CostEstimate(
            flops=flops,
            transcendentals=2 * n_layers * B * hidden,
            bytes_accessed=bytes_accessed),
    )(x_in, *[stacked_params[k] for k in _STACK_ORDER])

    # --- stage 2: tiny epilogue (average, normalize, logits, BSC) -----------
    vmem = pl.BlockSpec(memory_space=pltpu.MemorySpace.VMEM)
    return pl.pallas_call(
        functools.partial(epilogue_kernel, use_bsc=use_bsc),
        out_shape=jax.ShapeDtypeStruct((B, B), jnp.float32),
        in_specs=[vmem, vmem],
        out_specs=vmem,
    )(x_br, text_feats)


# ----------------------------------------------------------------------------
# Parameter init (mirrors the torch module; Linear weights pre-transposed to
# (in, out); q/k/ln_y1 params exist only for the full-path reference).
# ----------------------------------------------------------------------------
def init_block_params(key, d_model):
    hidden = 4 * d_model
    keys = jax.random.split(key, 5)

    def linear(k, din, dout):
        bound = 1.0 / (din ** 0.5)
        kw, kb = jax.random.split(k)
        w = jax.random.uniform(kw, (din, dout), jnp.float32, -bound, bound)
        b = jax.random.uniform(kb, (1, dout), jnp.float32, -bound, bound)
        return w, b

    wq, bq = linear(keys[0], d_model, d_model)     # unused by kernel (seq==1)
    wk, bk = linear(keys[1], d_model, d_model)     # unused by kernel (seq==1)
    wv, bv = linear(keys[2], d_model, d_model)
    wfc, bfc = linear(keys[3], d_model, hidden)
    wproj, bproj = linear(keys[4], hidden, d_model)
    ones = jnp.ones((1, d_model), jnp.float32)
    zeros = jnp.zeros((1, d_model), jnp.float32)
    return dict(
        lnx_g=ones, lnx_b=zeros, lny_g=ones, lny_b=zeros,
        wq=wq, bq=bq, wk=wk, bk=bk, wv=wv, bv=bv,
        ln2_g=ones, ln2_b=zeros,
        wfc=wfc, bfc=bfc, wproj=wproj, bproj=bproj,
    )


def init_alignment_params(key, d_model, n_layers):
    k0, k1 = jax.random.split(key)
    return {
        "cross0": [init_block_params(jax.random.fold_in(k0, i), d_model)
                   for i in range(n_layers)],
        "cross1": [init_block_params(jax.random.fold_in(k1, i), d_model)
                   for i in range(n_layers)],
    }


def quantize_matmul_weights(params, dtype=jnp.bfloat16):
    """Deployment precision policy: round wv/wfc/wproj to bf16 (and back to
    f32 for the reference) so kernel and reference see identical weights."""
    def q(p):
        p = dict(p)
        for k in _W_KEYS:
            p[k] = p[k].astype(dtype).astype(jnp.float32)
        return p
    return {br: [q(p) for p in params[br]] for br in ("cross0", "cross1")}


# ----------------------------------------------------------------------------
# Pure-JAX reference with the FULL attention math (q/k/softmax, seq == 1) to
# demonstrate that the fused kernel's simplification is exact.
# ----------------------------------------------------------------------------
def _reference_forward(image_feats, text_feats, target_feats, params,
                       n_head, use_bsc):
    def block(x, y, p):
        B, D = x.shape
        d_k = D // n_head
        xa = _layernorm(x, p["lnx_g"], p["lnx_b"])
        ya = _layernorm(y, p["lny_g"], p["lny_b"])
        q = (ya @ p["wq"] + p["bq"]).reshape(B, n_head, 1, d_k)
        k = (xa @ p["wk"] + p["bk"]).reshape(B, n_head, 1, d_k)
        v = (xa @ p["wv"] + p["bv"]).reshape(B, n_head, 1, d_k)
        scores = jnp.einsum("bhqd,bhkd->bhqk", q, k) / jnp.sqrt(jnp.float32(d_k))
        p_attn = jax.nn.softmax(scores, axis=-1)
        attn = jnp.einsum("bhqk,bhkd->bhqd", p_attn, v).reshape(B, D)
        x = x + attn
        z = _layernorm(x, p["ln2_g"], p["ln2_b"])
        h = z @ p["wfc"] + p["bfc"]
        h = h * jax.nn.sigmoid(1.702 * h)
        return x + h @ p["wproj"] + p["bproj"]

    def stack(x, y, layer_params):
        for p in layer_params:
            x = block(x, y, p)
        return x

    x0 = stack(image_feats, target_feats, params["cross0"])
    x1 = stack(target_feats, image_feats, params["cross1"])
    rel_n = _l2_normalize((x0 + x1) * 0.5)
    txt_n = _l2_normalize(text_feats)
    logits = 100.0 * rel_n @ txt_n.T
    if use_bsc:
        logits = logits + jnp.mean((rel_n @ rel_n.T - txt_n @ txt_n.T) ** 2)
    return logits


if __name__ == "__main__":
    B = 8            # batch of (image, text, target) triplets
    D = 32           # clip_feature_dim
    N_LAYERS = 2     # cross_attn_layer
    N_HEADS = 4      # cross_attn_head

    root = jax.random.PRNGKey(0)
    k_img, k_txt, k_tgt, k_par = jax.random.split(root, 4)
    image_feats = jax.random.normal(k_img, (B, D), jnp.float32)
    text_feats = jax.random.normal(k_txt, (B, D), jnp.float32)
    target_feats = jax.random.normal(k_tgt, (B, D), jnp.float32)

    params = init_alignment_params(k_par, D, N_LAYERS)
    # bf16 weight policy: quantize once so the kernel (bf16 stacked weights)
    # and the full-path f32 reference see the SAME weights; the only residual
    # mismatch is the in-kernel bf16 activation feed into the MXU (f32 acc).
    params_q = quantize_matmul_weights(params)
    stacked = stack_alignment_params(params_q, N_LAYERS)   # wv/wfc/wproj bf16

    logits = alignment_forward(image_feats, text_feats, target_feats, stacked,
                               n_layers=N_LAYERS, use_bsc=True)
    jax.block_until_ready(logits)
    assert logits.shape == (B, B)

    with jax.default_matmul_precision("highest"):
        ref = _reference_forward(image_feats, text_feats, target_feats,
                                 params_q, n_head=N_HEADS, use_bsc=True)
    ref = jax.block_until_ready(ref)
    assert bool(jnp.all(jnp.isfinite(logits)))
    max_err = float(jnp.max(jnp.abs(logits - ref)))
    # Logit scale is 100 * cosine; the bf16 activation casts feeding the MXU
    # bound the deviation well below 1.0 at these shapes.
    assert max_err < 1.0, max_err

    print("KERNEL_OK")
</pallas_src>

<mosaic_0001>
module attributes {stable_mosaic.version = 11 : i64} {
  func.func @branch_layer_kernel(%arg0: i32, %arg1: i32, %arg2: memref<1x8x32xf32, #tpu.memory_space<vmem>>, %arg3: memref<1x1x1x32xf32, #tpu.memory_space<vmem>>, %arg4: memref<1x1x1x32xf32, #tpu.memory_space<vmem>>, %arg5: memref<1x1x32x32xbf16, #tpu.memory_space<vmem>>, %arg6: memref<1x1x1x32xf32, #tpu.memory_space<vmem>>, %arg7: memref<1x1x1x32xf32, #tpu.memory_space<vmem>>, %arg8: memref<1x1x1x32xf32, #tpu.memory_space<vmem>>, %arg9: memref<1x1x32x128xbf16, #tpu.memory_space<vmem>>, %arg10: memref<1x1x1x128xf32, #tpu.memory_space<vmem>>, %arg11: memref<1x1x128x32xbf16, #tpu.memory_space<vmem>>, %arg12: memref<1x1x1x32xf32, #tpu.memory_space<vmem>>, %arg13: memref<1x8x32xf32, #tpu.memory_space<vmem>>) attributes {dimension_semantics = [#tpu.dimension_semantics<parallel>, #tpu.dimension_semantics<arbitrary>], iteration_bounds = array<i64: 2, 2>, scalar_prefetch = 0 : i64, scratch_operands = 0 : i64, tpu.core_type = #tpu.core_type<tc>, window_params = [{transform_indices = @transform_0, window_bounds = array<i64: 1, 8, 32>}, {transform_indices = @transform_1, window_bounds = array<i64: 1, 1, 1, 32>}, {transform_indices = @transform_2, window_bounds = array<i64: 1, 1, 1, 32>}, {transform_indices = @transform_3, window_bounds = array<i64: 1, 1, 32, 32>}, {transform_indices = @transform_4, window_bounds = array<i64: 1, 1, 1, 32>}, {transform_indices = @transform_5, window_bounds = array<i64: 1, 1, 1, 32>}, {transform_indices = @transform_6, window_bounds = array<i64: 1, 1, 1, 32>}, {transform_indices = @transform_7, window_bounds = array<i64: 1, 1, 32, 128>}, {transform_indices = @transform_8, window_bounds = array<i64: 1, 1, 1, 128>}, {transform_indices = @transform_9, window_bounds = array<i64: 1, 1, 128, 32>}, {transform_indices = @transform_10, window_bounds = array<i64: 1, 1, 1, 32>}, {transform_indices = @transform_11, window_bounds = array<i64: 1, 8, 32>}]} {
    %c0_i32 = arith.constant 0 : i32
    %0 = arith.cmpi eq, %arg1, %c0_i32 : i32
    %1 = arith.extui %0 : i1 to i32
    %c0_i32_0 = arith.constant 0 : i32
    %2 = arith.cmpi ne, %1, %c0_i32_0 : i32
    scf.if %2 {
      %c0_60 = arith.constant 0 : index
      %c0_61 = arith.constant 0 : index
      %c0_62 = arith.constant 0 : index
      %90 = vector.load %arg2[%c0_60, %c0_61, %c0_62] : memref<1x8x32xf32, #tpu.memory_space<vmem>>, vector<1x8x32xf32>
      %91 = vector.shape_cast %90 : vector<1x8x32xf32> to vector<8x32xf32>
      %c0_63 = arith.constant 0 : index
      %c0_64 = arith.constant 0 : index
      %c0_65 = arith.constant 0 : index
      %92 = vector.load %arg13[%c0_63, %c0_64, %c0_65] : memref<1x8x32xf32, #tpu.memory_space<vmem>>, vector<1x8x32xf32>
      %93 = vector.shape_cast %92 : vector<1x8x32xf32> to vector<8x32xf32>
      %94 = vector.shape_cast %91 : vector<8x32xf32> to vector<1x8x32xf32>
      tpu.vector_store %arg13[%c0_63, %c0_64, %c0_65], %94 {strides = array<i32>} : memref<1x8x32xf32, #tpu.memory_space<vmem>>, vector<1x8x32xf32>,
    } else {
    }
    %c0 = arith.constant 0 : index
    %c0_1 = arith.constant 0 : index
    %c0_2 = arith.constant 0 : index
    %3 = vector.load %arg13[%c0, %c0_1, %c0_2] : memref<1x8x32xf32, #tpu.memory_space<vmem>>, vector<1x8x32xf32>
    %4 = vector.shape_cast %3 : vector<1x8x32xf32> to vector<8x32xf32>
    %c0_3 = arith.constant 0 : index
    %c0_4 = arith.constant 0 : index
    %c0_5 = arith.constant 0 : index
    %c0_6 = arith.constant 0 : index
    %5 = vector.load %arg3[%c0_3, %c0_4, %c0_5, %c0_6] : memref<1x1x1x32xf32, #tpu.memory_space<vmem>>, vector<1x1x1x32xf32>
    %6 = vector.shape_cast %5 : vector<1x1x1x32xf32> to vector<1x32xf32>
    %c0_7 = arith.constant 0 : index
    %c0_8 = arith.constant 0 : index
    %c0_9 = arith.constant 0 : index
    %c0_10 = arith.constant 0 : index
    %7 = vector.load %arg4[%c0_7, %c0_8, %c0_9, %c0_10] : memref<1x1x1x32xf32, #tpu.memory_space<vmem>>, vector<1x1x1x32xf32>
    %8 = vector.shape_cast %7 : vector<1x1x1x32xf32> to vector<1x32xf32>
    %cst = arith.constant dense<0.000000e+00> : vector<8xf32>
    %9 = vector.multi_reduction <add>, %4, %cst [1] : vector<8x32xf32> to vector<8xf32>
    %10 = vector.shape_cast %9 : vector<8xf32> to vector<8x1xf32>
    %cst_11 = arith.constant 3.200000e+01 : f32
    %11 = vector.broadcast %cst_11 : f32 to vector<8x1xf32>
    %12 = arith.divf %10, %11 : vector<8x1xf32>
    %13 = vector.broadcast %12 : vector<8x1xf32> to vector<8x32xf32>
    %14 = arith.subf %4, %13 : vector<8x32xf32>
    %15 = arith.mulf %14, %14 : vector<8x32xf32>
    %cst_12 = arith.constant dense<0.000000e+00> : vector<8xf32>
    %16 = vector.multi_reduction <add>, %15, %cst_12 [1] : vector<8x32xf32> to vector<8xf32>
    %17 = vector.shape_cast %16 : vector<8xf32> to vector<8x1xf32>
    %cst_13 = arith.constant 3.200000e+01 : f32
    %18 = vector.broadcast %cst_13 : f32 to vector<8x1xf32>
    %19 = arith.divf %17, %18 : vector<8x1xf32>
    %cst_14 = arith.constant 9.99999974E-6 : f32
    %20 = vector.broadcast %cst_14 : f32 to vector<8x1xf32>
    %21 = arith.addf %19, %20 : vector<8x1xf32>
    %22 = math.rsqrt %21 : vector<8x1xf32>
    %23 = vector.broadcast %22 : vector<8x1xf32> to vector<8x32xf32>
    %24 = arith.mulf %14, %23 : vector<8x32xf32>
    %25 = vector.broadcast %6 : vector<1x32xf32> to vector<8x32xf32>
    %26 = arith.mulf %24, %25 : vector<8x32xf32>
    %27 = vector.broadcast %8 : vector<1x32xf32> to vector<8x32xf32>
    %28 = arith.addf %26, %27 : vector<8x32xf32>
    %29 = arith.truncf %28 : vector<8x32xf32> to vector<8x32xbf16>
    %c0_15 = arith.constant 0 : index
    %c0_16 = arith.constant 0 : index
    %c0_17 = arith.constant 0 : index
    %c0_18 = arith.constant 0 : index
    %30 = vector.load %arg5[%c0_15, %c0_16, %c0_17, %c0_18] : memref<1x1x32x32xbf16, #tpu.memory_space<vmem>>, vector<1x1x32x32xbf16>
    %31 = vector.shape_cast %30 : vector<1x1x32x32xbf16> to vector<32x32xbf16>
    %cst_19 = arith.constant dense<0.000000e+00> : vector<8x32xf32>
    %32 = tpu.matmul %29, %31, %cst_19 {dimension_numbers = #tpu.dot_dimension_numbers<[1], [0], [0], [1], [0, 0, 1, 1], [], []>} : vector<8x32xbf16>, vector<32x32xbf16>, vector<8x32xf32> -> vector<8x32xf32>
    %c0_20 = arith.constant 0 : index
    %c0_21 = arith.constant 0 : index
    %c0_22 = arith.constant 0 : index
    %c0_23 = arith.constant 0 : index
    %33 = vector.load %arg6[%c0_20, %c0_21, %c0_22, %c0_23] : memref<1x1x1x32xf32, #tpu.memory_space<vmem>>, vector<1x1x1x32xf32>
    %34 = vector.shape_cast %33 : vector<1x1x1x32xf32> to vector<1x32xf32>
    %35 = vector.broadcast %34 : vector<1x32xf32> to vector<8x32xf32>
    %36 = arith.addf %32, %35 : vector<8x32xf32>
    %37 = arith.addf %4, %36 : vector<8x32xf32>
    %c0_24 = arith.constant 0 : index
    %c0_25 = arith.constant 0 : index
    %c0_26 = arith.constant 0 : index
    %c0_27 = arith.constant 0 : index
    %38 = vector.load %arg7[%c0_24, %c0_25, %c0_26, %c0_27] : memref<1x1x1x32xf32, #tpu.memory_space<vmem>>, vector<1x1x1x32xf32>
    %39 = vector.shape_cast %38 : vector<1x1x1x32xf32> to vector<1x32xf32>
    %c0_28 = arith.constant 0 : index
    %c0_29 = arith.constant 0 : index
    %c0_30 = arith.constant 0 : index
    %c0_31 = arith.constant 0 : index
    %40 = vector.load %arg8[%c0_28, %c0_29, %c0_30, %c0_31] : memref<1x1x1x32xf32, #tpu.memory_space<vmem>>, vector<1x1x1x32xf32>
    %41 = vector.shape_cast %40 : vector<1x1x1x32xf32> to vector<1x32xf32>
    %cst_32 = arith.constant dense<0.000000e+00> : vector<8xf32>
    %42 = vector.multi_reduction <add>, %37, %cst_32 [1] : vector<8x32xf32> to vector<8xf32>
    %43 = vector.shape_cast %42 : vector<8xf32> to vector<8x1xf32>
    %cst_33 = arith.constant 3.200000e+01 : f32
    %44 = vector.broadcast %cst_33 : f32 to vector<8x1xf32>
    %45 = arith.divf %43, %44 : vector<8x1xf32>
    %46 = vector.broadcast %45 : vector<8x1xf32> to vector<8x32xf32>
    %47 = arith.subf %37, %46 : vector<8x32xf32>
    %48 = arith.mulf %47, %47 : vector<8x32xf32>
    %cst_34 = arith.constant dense<0.000000e+00> : vector<8xf32>
    %49 = vector.multi_reduction <add>, %48, %cst_34 [1] : vector<8x32xf32> to vector<8xf32>
    %50 = vector.shape_cast %49 : vector<8xf32> to vector<8x1xf32>
    %cst_35 = arith.constant 3.200000e+01 : f32
    %51 = vector.broadcast %cst_35 : f32 to vector<8x1xf32>
    %52 = arith.divf %50, %51 : vector<8x1xf32>
    %cst_36 = arith.constant 9.99999974E-6 : f32
    %53 = vector.broadcast %cst_36 : f32 to vector<8x1xf32>
    %54 = arith.addf %52, %53 : vector<8x1xf32>
    %55 = math.rsqrt %54 : vector<8x1xf32>
    %56 = vector.broadcast %55 : vector<8x1xf32> to vector<8x32xf32>
    %57 = arith.mulf %47, %56 : vector<8x32xf32>
    %58 = vector.broadcast %39 : vector<1x32xf32> to vector<8x32xf32>
    %59 = arith.mulf %57, %58 : vector<8x32xf32>
    %60 = vector.broadcast %41 : vector<1x32xf32> to vector<8x32xf32>
    %61 = arith.addf %59, %60 : vector<8x32xf32>
    %62 = arith.truncf %61 : vector<8x32xf32> to vector<8x32xbf16>
    %c0_37 = arith.constant 0 : index
    %c0_38 = arith.constant 0 : index
    %c0_39 = arith.constant 0 : index
    %c0_40 = arith.constant 0 : index
    %63 = vector.load %arg9[%c0_37, %c0_38, %c0_39, %c0_40] : memref<1x1x32x128xbf16, #tpu.memory_space<vmem>>, vector<1x1x32x128xbf16>
    %64 = vector.shape_cast %63 : vector<1x1x32x128xbf16> to vector<32x128xbf16>
    %cst_41 = arith.constant dense<0.000000e+00> : vector<8x128xf32>
    %65 = tpu.matmul %62, %64, %cst_41 {dimension_numbers = #tpu.dot_dimension_numbers<[1], [0], [0], [1], [0, 0, 1, 1], [], []>} : vector<8x32xbf16>, vector<32x128xbf16>, vector<8x128xf32> -> vector<8x128xf32>
    %c0_42 = arith.constant 0 : index
    %c0_43 = arith.constant 0 : index
    %c0_44 = arith.constant 0 : index
    %c0_45 = arith.constant 0 : index
    %66 = vector.load %arg10[%c0_42, %c0_43, %c0_44, %c0_45] : memref<1x1x1x128xf32, #tpu.memory_space<vmem>>, vector<1x1x1x128xf32>
    %67 = vector.shape_cast %66 : vector<1x1x1x128xf32> to vector<1x128xf32>
    %68 = vector.broadcast %67 : vector<1x128xf32> to vector<8x128xf32>
    %69 = arith.addf %65, %68 : vector<8x128xf32>
    %cst_46 = arith.constant 1.702000e+00 : f32
    %70 = vector.broadcast %cst_46 : f32 to vector<8x128xf32>
    %71 = arith.mulf %70, %69 : vector<8x128xf32>
    %72 = arith.negf %71 : vector<8x128xf32>
    %73 = math.exp %72 : vector<8x128xf32>
    %cst_47 = arith.constant 1.000000e+00 : f32
    %74 = vector.broadcast %cst_47 : f32 to vector<8x128xf32>
    %75 = arith.addf %74, %73 : vector<8x128xf32>
    %76 = arith.divf %74, %75 : vector<8x128xf32>
    %77 = arith.mulf %69, %76 : vector<8x128xf32>
    %78 = arith.truncf %77 : vector<8x128xf32> to vector<8x128xbf16>
    %c0_48 = arith.constant 0 : index
    %c0_49 = arith.constant 0 : index
    %c0_50 = arith.constant 0 : index
    %c0_51 = arith.constant 0 : index
    %79 = vector.load %arg11[%c0_48, %c0_49, %c0_50, %c0_51] : memref<1x1x128x32xbf16, #tpu.memory_space<vmem>>, vector<1x1x128x32xbf16>
    %80 = vector.shape_cast %79 : vector<1x1x128x32xbf16> to vector<128x32xbf16>
    %cst_52 = arith.constant dense<0.000000e+00> : vector<8x32xf32>
    %81 = tpu.matmul %78, %80, %cst_52 {dimension_numbers = #tpu.dot_dimension_numbers<[1], [0], [0], [1], [0, 0, 1, 1], [], []>} : vector<8x128xbf16>, vector<128x32xbf16>, vector<8x32xf32> -> vector<8x32xf32>
    %c0_53 = arith.constant 0 : index
    %c0_54 = arith.constant 0 : index
    %c0_55 = arith.constant 0 : index
    %c0_56 = arith.constant 0 : index
    %82 = vector.load %arg12[%c0_53, %c0_54, %c0_55, %c0_56] : memref<1x1x1x32xf32, #tpu.memory_space<vmem>>, vector<1x1x1x32xf32>
    %83 = vector.shape_cast %82 : vector<1x1x1x32xf32> to vector<1x32xf32>
    %84 = vector.broadcast %83 : vector<1x32xf32> to vector<8x32xf32>
    %85 = arith.addf %81, %84 : vector<8x32xf32>
    %86 = arith.addf %37, %85 : vector<8x32xf32>
    %c0_57 = arith.constant 0 : index
    %c0_58 = arith.constant 0 : index
    %c0_59 = arith.constant 0 : index
    %87 = vector.load %arg13[%c0_57, %c0_58, %c0_59] : memref<1x8x32xf32, #tpu.memory_space<vmem>>, vector<1x8x32xf32>
    %88 = vector.shape_cast %87 : vector<1x8x32xf32> to vector<8x32xf32>
    %89 = vector.shape_cast %86 : vector<8x32xf32> to vector<1x8x32xf32>
    tpu.vector_store %arg13[%c0_57, %c0_58, %c0_59], %89 {strides = array<i32>} : memref<1x8x32xf32, #tpu.memory_space<vmem>>, vector<1x8x32xf32>,
    return
  }
  func.func @transform_0(%arg0: i32, %arg1: i32) -> (i32, i32, i32) {
    %c0_i32 = arith.constant 0 : i32
    %c0_i32_0 = arith.constant 0 : i32
    %c0_i32_1 = arith.constant 0 : i32
    return %arg0, %c0_i32, %c0_i32_0 : i32, i32, i32
  }
  func.func @transform_1(%arg0: i32, %arg1: i32) -> (i32, i32, i32, i32) {
    %c0_i32 = arith.constant 0 : i32
    %c0_i32_0 = arith.constant 0 : i32
    %c0_i32_1 = arith.constant 0 : i32
    return %arg0, %arg1, %c0_i32, %c0_i32_0 : i32, i32, i32, i32
  }
  func.func @transform_2(%arg0: i32, %arg1: i32) -> (i32, i32, i32, i32) {
    %c0_i32 = arith.constant 0 : i32
    %c0_i32_0 = arith.constant 0 : i32
    %c0_i32_1 = arith.constant 0 : i32
    return %arg0, %arg1, %c0_i32, %c0_i32_0 : i32, i32, i32, i32
  }
  func.func @transform_3(%arg0: i32, %arg1: i32) -> (i32, i32, i32, i32) {
    %c0_i32 = arith.constant 0 : i32
    %c0_i32_0 = arith.constant 0 : i32
    %c0_i32_1 = arith.constant 0 : i32
    return %arg0, %arg1, %c0_i32, %c0_i32_0 : i32, i32, i32, i32
  }
  func.func @transform_4(%arg0: i32, %arg1: i32) -> (i32, i32, i32, i32) {
    %c0_i32 = arith.constant 0 : i32
    %c0_i32_0 = arith.constant 0 : i32
    %c0_i32_1 = arith.constant 0 : i32
    return %arg0, %arg1, %c0_i32, %c0_i32_0 : i32, i32, i32, i32
  }
  func.func @transform_5(%arg0: i32, %arg1: i32) -> (i32, i32, i32, i32) {
    %c0_i32 = arith.constant 0 : i32
    %c0_i32_0 = arith.constant 0 : i32
    %c0_i32_1 = arith.constant 0 : i32
    return %arg0, %arg1, %c0_i32, %c0_i32_0 : i32, i32, i32, i32
  }
  func.func @transform_6(%arg0: i32, %arg1: i32) -> (i32, i32, i32, i32) {
    %c0_i32 = arith.constant 0 : i32
    %c0_i32_0 = arith.constant 0 : i32
    %c0_i32_1 = arith.constant 0 : i32
    return %arg0, %arg1, %c0_i32, %c0_i32_0 : i32, i32, i32, i32
  }
  func.func @transform_7(%arg0: i32, %arg1: i32) -> (i32, i32, i32, i32) {
    %c0_i32 = arith.constant 0 : i32
    %c0_i32_0 = arith.constant 0 : i32
    %c0_i32_1 = arith.constant 0 : i32
    return %arg0, %arg1, %c0_i32, %c0_i32_0 : i32, i32, i32, i32
  }
  func.func @transform_8(%arg0: i32, %arg1: i32) -> (i32, i32, i32, i32) {
    %c0_i32 = arith.constant 0 : i32
    %c0_i32_0 = arith.constant 0 : i32
    %c0_i32_1 = arith.constant 0 : i32
    return %arg0, %arg1, %c0_i32, %c0_i32_0 : i32, i32, i32, i32
  }
  func.func @transform_9(%arg0: i32, %arg1: i32) -> (i32, i32, i32, i32) {
    %c0_i32 = arith.constant 0 : i32
    %c0_i32_0 = arith.constant 0 : i32
    %c0_i32_1 = arith.constant 0 : i32
    return %arg0, %arg1, %c0_i32, %c0_i32_0 : i32, i32, i32, i32
  }
  func.func @transform_10(%arg0: i32, %arg1: i32) -> (i32, i32, i32, i32) {
    %c0_i32 = arith.constant 0 : i32
    %c0_i32_0 = arith.constant 0 : i32
    %c0_i32_1 = arith.constant 0 : i32
    return %arg0, %arg1, %c0_i32, %c0_i32_0 : i32, i32, i32, i32
  }
  func.func @transform_11(%arg0: i32, %arg1: i32) -> (i32, i32, i32) {
    %c0_i32 = arith.constant 0 : i32
    %c0_i32_0 = arith.constant 0 : i32
    %c0_i32_1 = arith.constant 0 : i32
    return %arg0, %c0_i32, %c0_i32_0 : i32, i32, i32
  }
}

</mosaic_0001>

<bundles_post_ra>
// kernel: tpu_custom_call.1
= control target key start
LH: loop header
LB: loop body
LE: loop exit
PB: predicated region body
PF: predicated region fallthrough
CT: control target
= control target key end

     0   :  { %s1890_s0 = inlined_call_operand.vmem [shape: f32[2,8,32], index: 0, kind: input, shape index: {}]   ;;  %s1891_s1 = inlined_call_operand.vmem [shape: f32[2,2,1,32], index: 1, kind: input, shape index: {}]   ;;  %s1892_s2 = inlined_call_operand.vmem [shape: f32[2,2,1,32], index: 2, kind: input, shape index: {}]   ;;  %s1893_s3 = inlined_call_operand.vmem [shape: bf16[2,2,32,32], index: 3, kind: input, shape index: {}]   ;;  %s1894_s4 = inlined_call_operand.vmem [shape: f32[2,2,1,32], index: 4, kind: input, shape index: {}]   ;;  %s1895_s5 = inlined_call_operand.vmem [shape: f32[2,2,1,32], index: 5, kind: input, shape index: {}]   ;;  %s1896_s6 = inlined_call_operand.vmem [shape: f32[2,2,1,32], index: 6, kind: input, shape index: {}]   ;;  %s1897_s7 = inlined_call_operand.vmem [shape: bf16[2,2,32,128], index: 7, kind: input, shape index: {}]   ;;  %s1898_s8 = inlined_call_operand.vmem [shape: f32[2,2,1,128], index: 8, kind: input, shape index: {}]   ;;  %s1899_s9 = inlined_call_operand.vmem [shape: bf16[2,2,128,32], index: 9, kind: input, shape index: {}]   ;;  %s1900_s10 = inlined_call_operand.vmem [shape: f32[2,2,1,32], index: 10, kind: input, shape index: {}]   ;;  %s1901_s11 = inlined_call_operand.hbm [shape: f32[2,8,32], index: 11, kind: output, shape index: {}]  }
   0x1   :  { %1917 = sst [smem:[#allocation18_spill]] %s1890_s0 }
   0x2   :  { %1918 = sst [smem:[#allocation19_spill]] %s1891_s1 }
   0x3   :  { %1919 = sst [smem:[#allocation20_spill]] %s1893_s3 }
   0x4   :  { %1920 = sst [smem:[#allocation21_spill]] %s1899_s9 }
   0x5   :  { %1921 = sst [smem:[#allocation22_spill]] %s1901_s11 }
   0x6   :  { %16 = vsyncpa [#allocation3], 0 }
   0x7   :  { %18 = vsyncpa [#allocation3 + $0x1], 0  ;;  %s1623_s17 = smov 0   ;;  %s1625_s18 = smov 0  }
   0x8   :  { %s1627_s19 = smov 0   ;;  %s1629_s20 = smov 0  }
   0x9   :  { %s1631_s21 = smov 0   ;;  %s1633_s22 = smov 0  }
   0xa   :  { %s1635_s23 = smov 0   ;;  %s1637_s24 = smov 0  }
   0xb LB: > { %1922 = sst [smem:[#allocation5_spill]] %s1530_s17  ;;  %s1270_s25 = sadd.s32 4294967295, %s1558_s24   ;;  %s1558_s24 = sphi %s1637_s24, %s24_s24   ;;  %s1554_s23 = sphi %s1635_s23, %s1963_s23   ;;  %s1550_s22 = sphi %s1633_s22, %s1962_s22   ;;  %s1546_s21 = sphi %s1631_s21, %s1961_s21   ;;  %s1542_s20 = sphi %s1629_s20, %s1960_s20   ;;  %s1538_s19 = sphi %s1627_s19, %s1959_s19   ;;  %s1534_s18 = sphi %s1625_s18, %s1958_s18   ;;  %s1530_s17 = sphi %s1623_s17, %s1957_s17  }
   0xc   : > { %1923 = sst [smem:[#allocation6_spill]] %s1534_s18  ;;  %s1271_s26 = sadd.s32 4294967294, %s1558_s24  }
   0xd   : > { %1924 = sst [smem:[#allocation7_spill]] %s1538_s19  ;;  %s33_s27 = sadd.s32 1, %s1550_s22 }
   0xe   : > { %1925 = sst [smem:[#allocation8_spill]] %s1542_s20  ;;  %p34_p0 = scmp.ge.s32.totalorder %s33_s27, 2 }
   0xf   : > { %1926 = sst [smem:[#allocation9_spill]] %s1546_s21  ;;  %s36_s28 = sadd.s32 1, %s1554_s23 }
  0x10   : > { %1927 = sst [smem:[#allocation10_spill]] %s1550_s22  ;;  %p359_p1 = scmp.ne.s32.totalorder %s1538_s19, %s1534_s18 }
  0x11   : > { %1928 = sst [smem:[#allocation11_spill]] %s1554_s23  ;;  %p360_p2 = scmp.eq.s32.totalorder %s1270_s25, 3 }
  0x12   : > { %1929 = sst [smem:[#allocation12_spill]] %s1558_s24  ;;  %s1965_s27 = smov (%p34_p0, %s33_s27), 0 }
  0x13   : > { %1930 = sst [smem:[#allocation13_spill]] %s1965_s27  ;;  %s1967_s28 = smov (!%p34_p0, %s36_s28), %s1554_s23 }
  0x14   : > { %p1672_p3 = por %p360_p2, %p359_p1  ;;  %p365_p4 = scmp.ne.s32.totalorder %s1534_s18, %s1530_s17 }
  0x15   : > { %p38_p5 = scmp.ge.s32.totalorder %s1967_s28, 2  ;;  %p366_p6 = scmp.eq.s32.totalorder %s1271_s26, 3 }
  0x16   : > { %s1931_s29 = scalar_select %p1672_p3, 1, 0 }
  0x17   : > { %p1274_p7 = scmp.ge.s32.totalorder %s1558_s24, 1  ;;  %p497_p8 = scmp.lt.s32.totalorder %s1558_s24, 5 }
  0x18   : > { %1932 = sst [smem:[#allocation14_spill]] %s1931_s29  ;;  %s1969_s28 = smov (%p38_p5, %s1967_s28), 0 }
  0x19   : > { %1933 = sst [smem:[#allocation15_spill]] %s1969_s28  ;;  %p1682_p9 = por %p366_p6, %p365_p4 }
  0x1a   : > { %p498_p10 = pnand %p1274_p7, %p497_p8  ;;  %s346_s12 = ssub.s32 %s1554_s23, %s1969_s28 }
  0x1b   : > { %s1934_s30 = scalar_select %p1682_p9, 1, 0 }
  0x1c   : > { %s349_s13 = sadd.s32 1, %s1538_s19  ;;  %p347_p11 = scmp.eq.s32.totalorder %s346_s12, 0 }
  0x1d   : > { %1935 = sst [smem:[#allocation16_spill]] %s1934_s30  ;;  %501 = sbr.rel (%p498_p10) target bundleno = 1384 (0x568), region = 64 }
  0x1e   : > { %s1690_s14 = scalar_select %p347_p11, %s1538_s19, %s349_s13  }
  0x1f   : > { %s1906_s15 = sand.u32 (!%p498_p10), 1, %s1534_s18   ;;  %p612_p12 = scmp.lt.s32.totalorder (!%p498_p10), %s1546_s21, 1 }
  0x20   : > { %1936 = sst [smem:[#allocation17_spill]] %s1690_s14  ;;  %s1275_s16 = sshll.u32 (!%p498_p10), %s1906_s15, 3 }
  0x21   : > { %p618_p13 = scmp.lt.s32.totalorder (!%p498_p10), %s1542_s20, 1  ;;  %s1937_s0 = sld [smem:[#allocation18_spill]] (!%p498_p10) }
  0x22   : > { %s1939_s3 = sld [smem:[#allocation20_spill]] (!%p498_p10)  ;;  %s1747_s24 = scalar_lea.vmem (!%p498_p10), [#allocation2], %s1275_s16 }
  0x24   : > { %s613_s25 = scalar_select %p612_p12, %s1546_s21, 1 }
  0x25   : > { %s619_s26 = scalar_select %p618_p13, %s1542_s20, 1 }
  0x26   : > { %s1276_s27 = sshll.u32 %s613_s25, 3  ;;  %s1277_s28 = sshll.u32 %s613_s25, 1 }
  0x27   : > { %s615_s13 = scalar_lea.vmem %s1937_s0, %s1276_s27  ;;  %s1702_s22 = sadd.s32 %s1277_s28, %s619_s26 }
  0x28   : > { %s1279_s11 = sshll.u32 %s619_s26, 2  ;;  %s675_s18 = scalar_lea.vmem %s1898_s8, %s1702_s22 }
  0x29   : > { %s636_s0 = sadd.s32 %s1279_s11, %s1276_s27  ;;  %s1289_s29 = sshll.u32 %s619_s26, 4 }
  0x2a   : > { %s1281_s14 = sshll.u32 %s636_s0, 2  ;;  %s1290_s0 = sshll.u32 %s613_s25, 5 }
  0x2b   : > { %s1727_s17 = scalar_lea.vmem %s1939_s3, %s1281_s14  ;;  %s1732_s23 = scalar_lea.vmem %s1897_s7, %s1281_s14 }
  0x2c   : > { %s691_s20 = scalar_lea.vmem %s1900_s10, %s1702_s22  ;;  %s682_s21 = sadd.s32 %s1290_s0, %s1289_s29 }
  0x2d   : > { %s1291_s9 = sshll.u32 %s682_s21, 2  ;;  %s1940_s28 = sld [smem:[#allocation21_spill]] }
  0x2e   : > { %s1941_s14 = sld [smem:[#allocation8_spill]] }
  0x33   : > { %s1745_s3 = scalar_lea.vmem %s1940_s28, %s1291_s9 }
  0x34   : > { %p1293_p0 = scmp.ne.s32.totalorder %s1941_s14, 0 }
  0x35   : > { %v697_v0 = vld [vmem:[%s615_s13] sm:$0xff] (!%p1293_p0)  ;;  %vm698_vm0 = vcmask (!%p1293_p0), 261120  }
  0x36   : > { %696 = sbr.rel (%p1293_p0) target bundleno = 61 (0x3d), region = 68  ;;  %699 = vst.msk [vmem:[%s1747_s24] sm:$0xff] (!%p1293_p0), %vm698_vm0, %v697_v0 }
  0x3d PF: > { %v700_v1 = vld [vmem:[%s1747_s24] sm:$0xff]  ;;  %vm703_vm1 = vcmask 261120   ;;  %v1560_v9 = vmov 0.0   ;;  %vm1561_vm2 = vmmov 0   ;;  %s1942_s25 = sld [smem:[#allocation19_spill]]  ;;  %s1944_s19 = scalar_lea.vmem %s1892_s2, %s1702_s22  ;;  %v1450_v48 = vld [vmem:[%s1745_s3 + $0x10] sm:$0xff]  }
  0x3e   : > { %v704_v2 = vsel %vm703_vm1, %v700_v1, 0.0  ;;  %v1444_v8 = vld [vmem:[%s1727_s17] sm:$0xff]   ;;  %1335 = vmatprep.subr.bf16.mxu1 %v1560_v9  ;;  %1351 = vmatprep.subr.bf16.mxu0 %v1560_v9  ;;  %v1445_v10 = vld [vmem:[%s1727_s17 + $0x8] sm:$0xff]   ;;  %s1945_s11 = scalar_lea.vmem %s1894_s4, %s1702_s22  ;;  %s1946_s0 = scalar_lea.vmem %s1895_s5, %s1702_s22  ;;  %v1451_v49 = vld [vmem:[%s1745_s3 + $0x18] sm:$0xff]  }
  0x3f   : > { %705 = vadd.xlane.f32.xlu0 %v704_v2  ;;  %1336 = vmatpush3.bf16.msra.mxu1 %v1444_v8  ;;  %v1295_v17 = vld [vmem:[%s1944_s19] ss:$0 sm:$0xff]  ;;  %v1447_v35 = vld [vmem:[%s1732_s23 + $0x8] sm:$0xff]   ;;  %s1947_s1 = scalar_lea.vmem %s1896_s6, %s1702_s22  ;;  %v1454_v52 = vld [vmem:[%s1745_s3 + $0x30] sm:$0xff]   ;;  %s1948_s14 = sld [smem:[#allocation9_spill]] }
  0x40   : > { %1339 = vmatprep.mubr.msk.bf16.mxu1 %vm1561_vm2, %v1560_v9  ;;  %1337 = vmatprep.subr.bf16.mxu1 %v1560_v9  ;;  %v1296_v21 = vld [vmem:[%s1945_s11] ss:$0 sm:$0xff]  ;;  %v1449_v47 = vld [vmem:[%s1745_s3 + $0x8] sm:$0xff]   ;;  %v1455_v53 = vld [vmem:[%s1745_s3 + $0x38] sm:$0xff]   ;;  %s1951_s19 = sld [smem:[#allocation22_spill]]  ;;  %s1562_s27 = smov [#allocation2]  }
  0x41   : > { %1367 = vmatprep.mubr.msk.bf16.mxu0 %vm1561_vm2, %v1560_v9  ;;  %v1446_v34 = vld [vmem:[%s1732_s23] sm:$0xff]   ;;  %v1453_v51 = vld [vmem:[%s1745_s3 + $0x28] sm:$0xff]   ;;  %s1468_s29 = sshll.u32 %s1562_s27, 4  ;;  %s1469_s29 = int_to_ptr.vmem [resolvable:$false] %s1468_s29 }
  0x42   : > { %v1300_v40 = vld [vmem:[%s1946_s0] ss:$0 sm:$0xff]  ;;  %s1470_s0 = scalar_lea.vmem %s1469_s29, 256 }
  0x43   : > { %1338 = vmatpush3.bf16.msra.mxu1 %v1445_v10  ;;  %s1943_s26 = scalar_lea.vmem %s1942_s25, %s1702_s22  ;;  %v1301_v42 = vld [vmem:[%s1947_s1] ss:$0 sm:$0xff] }
  0x44   : > { %1343 = vmatprep.subr.bf16.mxu1 %v1560_v9  ;;  %v1294_v15 = vld [vmem:[%s1943_s26] ss:$0 sm:$0xff]  ;;  %s1032_s26 = sshll.u32 %s1747_s24, 4  ;;  %s1835_s26 = int_to_ptr.vmem [resolvable:$true] %s1032_s26 }
  0x45   : > { %v1448_v46 = vld [vmem:[%s1745_s3] sm:$0xff]   ;;  %s1317_s25 = sshll.u32 %s1948_s14, 7  ;;  %s1464_s11 = scalar_lea.vmem %s1835_s26, 128 }
  0x46   : > { %1352 = vmatpush3.bf16.msra.mxu0 %v1448_v46  ;;  %v1452_v50 = vld [vmem:[%s1745_s3 + $0x20] sm:$0xff]   ;;  %s1949_s3 = sld [smem:[#allocation6_spill]]  ;;  %s1952_s30 = smov %s1951_s19 }
  0x47   : > { %1353 = vmatprep.subr.bf16.mxu0 %v1560_v9  ;;  %v1302_v54 = vld [vmem:[%s675_s18] ss:$0 sm:$0xff]  ;;  %s1833_s17 = scalar_lea.hbm %s1951_s19, %s1317_s25  ;;  %p1465_p1 = scmp.ne.s32.totalorder %s1835_s26, %s1464_s11 }
  0x48   : > { %p1471_p5 = scmp.lt.s32.totalorder %s1835_s26, %s1469_s29  ;;  %p1472_p6 = scmp.lt.s32.totalorder %s1470_s0, %s1464_s11 }
  0x49   : > { %p1466_p2 = pnand %p1465_p1, %p1672_p3 }
  0x4a   : > { %1354 = vmatpush3.bf16.msra.mxu0 %v1449_v47  ;;  %p1473_p7 = por %p1472_p6, %p1471_p5 }
  0x4b   : > { %1355 = vmatprep.subr.bf16.mxu0 %v1560_v9  ;;  %p1467_p4 = pneg %p1466_p2 }
  0x4c   : > { %s1953_s22 = sand.u32 1, %s1949_s3  }
  0x4d   : > { %p1474_p8 = pnand %p1473_p7, %p1467_p4 }
  0x4e   : > { %1356 = vmatpush3.bf16.msra.mxu0 %v1450_v48 }
  0x4f   : > { %1357 = vmatprep.subr.bf16.mxu0 %v1560_v9 }
  0x52   : > { %1358 = vmatpush3.bf16.msra.mxu0 %v1451_v49 }
  0x53   : > { %1359 = vmatprep.subr.bf16.mxu0 %v1560_v9 }
  0x56   : > { %1360 = vmatpush3.bf16.msra.mxu0 %v1452_v50 }
  0x57   : > { %1361 = vmatprep.subr.bf16.mxu0 %v1560_v9 }
  0x5a   : > { %1362 = vmatpush3.bf16.msra.mxu0 %v1453_v51 }
  0x5b   : > { %1363 = vmatprep.subr.bf16.mxu0 %v1560_v9 }
  0x5e   : > { %1364 = vmatpush3.bf16.msra.mxu0 %v1454_v52 }
  0x5f   : > { %1365 = vmatprep.subr.bf16.mxu0 %v1560_v9 }
  0x62   : > { %1366 = vmatpush3.bf16.msra.mxu0 %v1455_v53 }
  0xcc   : > { %v706_v3 = vpop.xlane.xlu0 %705 }
  0xcd   : > { %v708_v4 = vmul.f32 0.03125, %v706_v3  ;;  %v1307_v3 = vld [vmem:[%s691_s20] ss:$0 sm:$0xff]  ;;  %s1019_s20 = scalar_lea.sflag [#allocation3], %s1953_s22 }
  0xcf   : > { %v709_v5 = vsub.f32 %v700_v1, %v708_v4 }
  0xd1   : > { %v710_v6 = vmul.f32 %v709_v5, %v709_v5 }
  0xd3   : > { %v711_v7 = vsel %vm703_vm1, %v710_v6, 0.0 }
  0xd4   : > { %712 = vadd.xlane.f32.xlu0 %v711_v7 }
 0x161   : > { %v713_v11 = vpop.xlane.xlu0 %712 }
 0x162   : > { %v714_v12 = vmul.f32 0.03125, %v713_v11 }
 0x164   : > { %v715_v13 = vadd.f32 1e-05, %v714_v12 }
 0x166   : > { %1456 = vrsqrt.f32 %v715_v13 }
 0x170   : > { %v1457_v14 = vpop.eup %1456 }
 0x171   : > { %v717_v16 = vmul.f32 %v1457_v14, %v709_v5 }
 0x173   : > { %v724_v18 = vmul.f32 %v1294_v15, %v717_v16 }
 0x175   : > { %v731_v19 = vadd.f32 %v1295_v17, %v724_v18 }
 0x177   : > { %v732_v20 = vpack.c.bf16 %v731_v19, %v731_v19 }
 0x179   : > { %1340 = vmatmul.mubr.msk.bf16.vlgmr.msra.gmra.mrb[0].mxu1 %vm703_vm1, %v732_v20 }
 0x17a   : > { %1347 = vmatprep.mubr.msk.bf16.mxu1 %vm1561_vm2, %v1560_v9  ;;  %1344 = vmatpush3.bf16.msra.mxu1 %v1446_v34 }
 0x17b   : > { %1345 = vmatprep.subr.bf16.mxu1 %v1560_v9 }
 0x17e   : > { %1346 = vmatpush3.bf16.msra.mxu1 %v1447_v35 }
 0x24c   : > { %v793_v22 = vpop.f32.mrb[0].mxu1 }
 0x24d   : > { %v794_v23 = vadd.f32 %v1296_v21, %v793_v22  ;;  %v1341_v24 = vpop.f32.mrb[1].mxu1 }
 0x24e   : > { %v796_v25 = vpop.f32.mrb[2].mxu1 }
 0x24f   : > { %v1782_v26 = vadd.f32 %v794_v23, %v700_v1  ;;  %v1342_v27 = vpop.f32.mrb[3].mxu1 }
 0x251   : > { %v802_v28 = vsel %vm703_vm1, %v1782_v26, 0.0 }
 0x252   : > { %803 = vadd.xlane.f32.xlu1 %v802_v28 }
 0x2df   : > { %v804_v29 = vpop.xlane.xlu1 %803 }
 0x2e0   : > { %v805_v30 = vmul.f32 0.03125, %v804_v29 }
 0x2e2   : > { %v806_v31 = vsub.f32 %v1782_v26, %v805_v30 }
 0x2e4   : > { %v807_v32 = vmul.f32 %v806_v31, %v806_v31 }
 0x2e6   : > { %v808_v33 = vsel %vm703_vm1, %v807_v32, 0.0 }
 0x2e7   : > { %809 = vadd.xlane.f32.xlu1 %v808_v33 }
 0x374   : > { %v810_v36 = vpop.xlane.xlu1 %809 }
 0x375   : > { %v811_v37 = vmul.f32 0.03125, %v810_v36 }
 0x377   : > { %v812_v38 = vadd.f32 1e-05, %v811_v37 }
 0x379   : > { %1458 = vrsqrt.f32 %v812_v38 }
 0x383   : > { %v1459_v39 = vpop.eup %1458 }
 0x384   : > { %v814_v41 = vmul.f32 %v1459_v39, %v806_v31 }
 0x386   : > { %v821_v43 = vmul.f32 %v1300_v40, %v814_v41 }
 0x388   : > { %v828_v44 = vadd.f32 %v1301_v42, %v821_v43 }
 0x38a   : > { %v829_v45 = vpack.c.bf16 %v828_v44, %v828_v44 }
 0x38c   : > { %1348 = vmatmul.mubr.msk.bf16.vlgmr.msra.gmra.mrb[4].mxu1 %vm703_vm1, %v829_v45 }
 0x45f   : > { %v890_v55 = vpop.f32.mrb[4].mxu1 }
 0x460   : > { %v891_v56 = vadd.f32 %v1302_v54, %v890_v55  ;;  %v1349_v57 = vpop.f32.mrb[5].mxu1 }
 0x461   : > { %v893_v58 = vpop.f32.mrb[6].mxu1 }
 0x462   : > { %v1306_v59 = vmul.f32 -1.702, %v891_v56  ;;  %v1350_v60 = vpop.f32.mrb[7].mxu1 }
 0x464   : > { %v898_v61 = vmul.f32 1.442695, %v1306_v59 }
 0x466   : > { %1460 = vpow2.f32 %v898_v61 }
 0x470   : > { %v1461_v62 = vpop.eup %1460 }
 0x471   : > { %v900_v63 = vadd.f32 1.0, %v1461_v62 }
 0x473   : > { %1462 = vrcp.f32 %v900_v63 }
 0x47d   : > { %v1463_v0 = vpop.eup %1462 }
 0x47e   : > { %v903_v1 = vmul.f32 %v1463_v0, %v891_v56 }
 0x480   : > { %v904_v2 = vpack.c.bf16 %v903_v1, %v903_v1 }
 0x482   : > { %1368 = vmatmul.mubr.bf16.vlgmr.msra.gmra.mrb[0].mxu0 %v904_v2 }
 0x555   : > { %v1010_v4 = vpop.f32.mrb[0].mxu0 }
 0x556   : > { %v1011_v5 = vadd.f32 %v1307_v3, %v1010_v4  ;;  %v1369_v6 = vpop.f32.mrb[1].mxu0 }
 0x557   : > { %v1013_v7 = vpop.f32.mrb[2].mxu0 }
 0x558   : > { %v1016_v8 = vadd.f32 %v1011_v5, %v1782_v26  ;;  %v1370_v9 = vpop.f32.mrb[3].mxu0 }
 0x55a   : > { %1017 = vst.msk [vmem:[%s1747_s24] sm:$0xff] %vm703_vm1, %v1016_v8 }
 0x55b   : > { %1477 = shalt.err (!%p1474_p8)
}
 0x55c   : > { %s1478_s24 = scalar_lea.hbm %s1833_s17, 128  ;;  %s1482_s1 = scalar_lea.hbm %s1952_s30, 256 }
 0x55d   : > { %p1479_p10 = scmp.ne.s32.totalorder %s1833_s17, %s1478_s24  ;;  %p1483_p13 = scmp.lt.u32.totalorder %s1833_s17, %s1952_s30 }
 0x55e   : > { %p1484_p0 = scmp.lt.u32.totalorder %s1482_s1, %s1478_s24  ;;  %p1486_p2 = scmp.lt.u32.totalorder %s1478_s24, %s1833_s17 }
 0x55f   : > { %p1480_p11 = pnand %p1479_p10, %p1672_p3 }
 0x560   : > { %p1485_p1 = por %p1484_p0, %p1483_p13 }
 0x561   : > { %p1481_p12 = pneg %p1480_p11 }
 0x562   : > { %p1487_p4 = por %p1486_p2, %p1485_p1 }
 0x564   : > { %p1488_p5 = pnand %p1487_p4, %p1481_p12 }
 0x566   : > { %1491 = shalt.err (!%p1488_p5)
}
 0x567   : > { %1371 = dma.vmem_to_hbm [thread:$0]  (%p1672_p3), %s1835_s26, 128, %s1833_s17, %s1019_s20  }
 0x568 PF: > { %s1954_s14 = sld [smem:[#allocation12_spill]]  ;;  %s1955_s3 = sld [smem:[#allocation5_spill]] }
 0x56e   : > { %p1377_p6 = scmp.ge.s32.totalorder %s1954_s14, 2  ;;  %s1044_s9 = sand.u32 1, %s1955_s3  }
 0x56f   : > { %s1045_s25 = scalar_lea.sflag [#allocation3], %s1044_s9 }
 0x570   : > { %p1374_p7 = pnand %p1377_p6, %p1682_p9 }
 0x572   : > { %1525 = dma.done.wait (!%p1374_p7), %s1045_s25, 128  }
 0x573   : > { %1527 = vsyncadd (!%p1374_p7), %s1045_s25, 4294967168  ;;  %s24_s24 = sadd.s32 1, %s1954_s14   ;;  %s1957_s17 = sld [smem:[#allocation6_spill]] }
 0x574   : > { %p21_p8 = scmp.ge.s32.totalorder %s24_s24, 6   ;;  %s1958_s18 = sld [smem:[#allocation7_spill]] }
 0x575   : > { %s1959_s19 = sld [smem:[#allocation17_spill]]  ;;  %s1960_s20 = sld [smem:[#allocation10_spill]] }
 0x576   : > { %s1961_s21 = sld [smem:[#allocation11_spill]]  ;;  %s1962_s22 = sld [smem:[#allocation13_spill]] }
 0x577   : > { %s1963_s23 = sld [smem:[#allocation15_spill]]  ;;  %23 = sbr.rel (!%p21_p8) target bundleno = 11 (0xb), region = 133 }
 0x57e   :  { %1050 = vsyncpa [#allocation3], 1 }
 0x57f   :  { %1052 = vsyncpa [#allocation3 + $0x1], 1 }

</bundles_post_ra>
